<compile_context>
chip_gen: v5e
topology: v5e:2x2
jax: 0.10.0
libtpu: 0.0.40
codegen_flags: <defaults>
</compile_context>

<pallas_src>
import math
import functools

import jax
import jax.numpy as jnp
from jax.experimental import pallas as pl
from jax.experimental.pallas import tpu as pltpu


def _self_attn_kernel(x_ref, mask_ref, wq_ref, bq_ref, wkv_ref, bkv_ref,
                      out_ref, kv_ref, *, num_heads, head_size, tq):
    hidden = num_heads * head_size
    inv_sqrt_d = 1.0 / math.sqrt(head_size)
    cdt = wq_ref.dtype                         # MXU compute dtype (bf16 fast path)
    qi = pl.program_id(1)

    # --- K|V projection: computed once per batch element, cached in VMEM scratch ---
    @pl.when(qi == 0)
    def _():
        x_kv = x_ref[0].astype(cdt)                                     # [S, H]
        kv = jnp.dot(x_kv, wkv_ref[...],
                     preferred_element_type=jnp.float32) + bkv_ref[...]  # [S, 2H] f32
        kv_ref[...] = kv.astype(kv_ref.dtype)

    # --- Q projection for this query-row tile (sliced from the resident block) ---
    row0 = pl.multiple_of(qi * tq, tq)
    x_q = x_ref[0, pl.ds(row0, tq), :].astype(cdt)                      # [tq, H]
    q = jnp.dot(x_q, wq_ref[...],
                preferred_element_type=jnp.float32) + bq_ref[...]       # [tq, H] f32
    q = (q * inv_sqrt_d).astype(cdt)            # fold 1/sqrt(d) into Q once (all heads)

    kv = kv_ref[...]                            # [S, 2H] in compute dtype
    k = kv[:, :hidden]                          # [S, H]
    v = kv[:, hidden:]                          # [S, H]

    mask = mask_ref[0].astype(jnp.float32)      # [1, S]; VPU broadcasts over sublanes

    ctx_heads = []
    for h in range(num_heads):                  # heads are static -> unrolled
        lo = h * head_size
        hi = lo + head_size
        qh = q[:, lo:hi]                        # [tq, d]
        kh = k[:, lo:hi]                        # [S, d]
        vh = v[:, lo:hi]                        # [S, d]

        # scores = qh @ kh^T (contract the head dim; no explicit transpose)
        scores = jax.lax.dot_general(
            qh, kh, (((1,), (1,)), ((), ())),
            preferred_element_type=jnp.float32)                         # [tq, S] f32
        scores = scores + mask                  # [1, S] broadcast, no materialized copy

        # numerically-stable softmax; normalization deferred until after P@V
        m = jnp.max(scores, axis=-1, keepdims=True)
        e = jnp.exp(scores - m)
        denom = jnp.sum(e, axis=-1, keepdims=True)                      # [tq, 1]

        ctx = jnp.dot(e.astype(cdt), vh,
                      preferred_element_type=jnp.float32)               # [tq, d]
        ctx = ctx * pl.reciprocal(denom, approx=True)                   # EUP, near-free
        ctx_heads.append(ctx)

    # Single lane-dense [tq, H] store instead of per-head 64-lane partial stores.
    out = jnp.concatenate(ctx_heads, axis=-1)
    out_ref[0] = out.astype(out_ref.dtype)


def _pick_query_tile(seq_len):
    # tq is the only free MXU M dimension (K and N are pinned to head_size):
    # v6e/v7x prefer 256 to fill the 256-row MXU; on v5e 128 already fills it and
    # halves the [tq, S] f32 score/exp temporaries. 256 is a good default when it
    # divides S; small sequences just use the full length.
    if seq_len <= 256:
        return seq_len
    for t in (256, 128):
        if seq_len % t == 0:
            return t
    return seq_len


def prepare_params(params, *, mxu_bf16=True, param_dtype=jnp.float32):
    """One-time parameter prep (call at load time, not per forward):
    nn.Linear weights are [out, in]; pre-transpose so y = x @ W^T + b, fuse K|V,
    and cast the matmul weights to the MXU compute dtype (bf16 fast path)."""
    cdt = jnp.bfloat16 if (mxu_bf16 and param_dtype == jnp.float32) else param_dtype
    H = params["wq"].shape[0]
    return {
        "wq_t": params["wq"].T.astype(cdt),                                   # [H, H]
        "wkv_t": jnp.concatenate([params["wk"].T, params["wv"].T],
                                 axis=1).astype(cdt),                         # [H, 2H]
        "bq": params["bq"].reshape(1, H).astype(jnp.float32),
        "bkv": jnp.concatenate([params["bk"], params["bv"]]
                               ).reshape(1, 2 * H).astype(jnp.float32),
    }


def bert_self_attention(hidden_states, attention_mask, prepared, *, num_heads,
                        tq=None):
    """hidden_states: [B, S, H]; attention_mask: [B, 1, S] additive mask.
    `prepared` comes from prepare_params()."""
    B, S, H = hidden_states.shape
    assert H % num_heads == 0
    head_size = H // num_heads

    if tq is None:
        tq = _pick_query_tile(S)
    assert S % tq == 0
    nqt = S // tq
    cdt = prepared["wq_t"].dtype                 # compute dtype for the K|V cache

    kernel = functools.partial(_self_attn_kernel, num_heads=num_heads,
                               head_size=head_size, tq=tq)

    # Grid-invariant operands: single-buffer (their block index never changes, so
    # pipelining them buys nothing and double-buffering just burns VMEM — relevant
    # on v7x's 64 MiB/TC budget).
    def const_spec(shape):
        return pl.BlockSpec(shape, lambda b, qi: (0, 0),
                            pipeline_mode=pl.Buffered(1))

    out = pl.pallas_call(
        kernel,
        out_shape=jax.ShapeDtypeStruct((B, S, H), hidden_states.dtype),
        grid=(B, nqt),
        in_specs=[
            pl.BlockSpec((1, S, H), lambda b, qi: (b, 0, 0)),   # full seq (Q rows + K/V)
            pl.BlockSpec((1, 1, S), lambda b, qi: (b, 0, 0)),   # additive mask
            const_spec((H, H)),                                 # Wq^T
            const_spec((1, H)),                                 # bq
            const_spec((H, 2 * H)),                             # [Wk|Wv]^T fused
            const_spec((1, 2 * H)),                             # [bk|bv] fused
        ],
        out_specs=pl.BlockSpec((1, tq, H), lambda b, qi: (b, qi, 0)),
        scratch_shapes=[pltpu.VMEM((S, 2 * H), cdt)],           # cached K|V projection
        compiler_params=pltpu.CompilerParams(
            # b "parallel" -> v7x megacore splits batch across TCs; qi must be
            # "arbitrary" so the K|V scratch cache is valid (measured ~zero cost on
            # single-TC v5e/v6e).
            dimension_semantics=("parallel", "arbitrary"),
            vmem_limit_bytes=48 * 1024 * 1024),
    )(hidden_states, attention_mask, prepared["wq_t"], prepared["bq"],
      prepared["wkv_t"], prepared["bkv"])
    return out


def _reference(hidden_states, attention_mask, params, *, num_heads):
    B, S, H = hidden_states.shape
    d = H // num_heads
    q = hidden_states @ params["wq"].T + params["bq"]
    k = hidden_states @ params["wk"].T + params["bk"]
    v = hidden_states @ params["wv"].T + params["bv"]

    def split(x):  # [B,S,H] -> [B,nh,S,d]
        return x.reshape(B, S, num_heads, d).transpose(0, 2, 1, 3)

    q, k, v = split(q), split(k), split(v)
    scores = jnp.einsum("bhqd,bhkd->bhqk", q, k) / math.sqrt(d)
    scores = scores + attention_mask[:, None, :, :]          # [B,1,1,S] broadcast
    probs = jax.nn.softmax(scores, axis=-1)
    ctx = jnp.einsum("bhqk,bhkd->bhqd", probs, v)
    return ctx.transpose(0, 2, 1, 3).reshape(B, S, H)


if __name__ == "__main__":
    B, S, H = 2, 8, 32
    num_heads = 4

    key = jax.random.PRNGKey(0)
    k_x, k_m, k_wq, k_wk, k_wv, k_bq, k_bk, k_bv = jax.random.split(key, 8)

    hidden_states = jax.random.normal(k_x, (B, S, H), dtype=jnp.float32)
    # additive mask: 0 for kept positions, -10000 for masked ones (BERT style)
    keep = (jax.random.uniform(k_m, (B, 1, S)) > 0.2).astype(jnp.float32)
    attention_mask = (1.0 - keep) * -10000.0

    scale = 1.0 / math.sqrt(H)
    params = {
        "wq": jax.random.normal(k_wq, (H, H), dtype=jnp.float32) * scale,
        "wk": jax.random.normal(k_wk, (H, H), dtype=jnp.float32) * scale,
        "wv": jax.random.normal(k_wv, (H, H), dtype=jnp.float32) * scale,
        "bq": jax.random.normal(k_bq, (H,), dtype=jnp.float32) * 0.01,
        "bk": jax.random.normal(k_bk, (H,), dtype=jnp.float32) * 0.01,
        "bv": jax.random.normal(k_bv, (H,), dtype=jnp.float32) * 0.01,
    }

    ref = _reference(hidden_states, attention_mask, params, num_heads=num_heads)

    # 1) exact-f32 MXU path: validates kernel plumbing against the f32 reference
    #    (only the approx softmax reciprocal differs -> tight tolerance).
    prep_exact = prepare_params(params, mxu_bf16=False)
    out_exact = bert_self_attention(hidden_states, attention_mask, prep_exact,
                                    num_heads=num_heads)
    out_exact = jax.block_until_ready(out_exact)
    assert out_exact.shape == (B, S, H)
    assert jnp.allclose(out_exact, ref, atol=5e-3, rtol=5e-3), \
        "exact-path mismatch vs reference"

    # 2) bf16-MXU fast path (the deployment configuration): looser tolerance for
    #    bf16 operand rounding + approx reciprocal.
    prep_fast = prepare_params(params, mxu_bf16=True)
    out_fast = bert_self_attention(hidden_states, attention_mask, prep_fast,
                                   num_heads=num_heads)
    out_fast = jax.block_until_ready(out_fast)
    assert out_fast.shape == (B, S, H)
    assert jnp.allclose(out_fast, ref, atol=5e-2, rtol=5e-2), \
        "bf16-path mismatch vs reference"

    print("KERNEL_OK")
</pallas_src>

<mosaic_0001>
module attributes {stable_mosaic.version = 11 : i64} {
  func.func @_self_attn_kernel(%arg0: i32, %arg1: i32, %arg2: memref<1x8x32xf32, #tpu.memory_space<vmem>>, %arg3: memref<1x1x8xf32, #tpu.memory_space<vmem>>, %arg4: memref<32x32xf32, #tpu.memory_space<vmem>>, %arg5: memref<1x32xf32, #tpu.memory_space<vmem>>, %arg6: memref<32x64xf32, #tpu.memory_space<vmem>>, %arg7: memref<1x64xf32, #tpu.memory_space<vmem>>, %arg8: memref<1x8x32xf32, #tpu.memory_space<vmem>>, %arg9: memref<8x64xf32, #tpu.memory_space<vmem>>) attributes {dimension_semantics = [#tpu.dimension_semantics<parallel>, #tpu.dimension_semantics<arbitrary>], iteration_bounds = array<i64: 2, 1>, scalar_prefetch = 0 : i64, scratch_operands = 1 : i64, tpu.core_type = #tpu.core_type<tc>, window_params = [{transform_indices = @transform_0, window_bounds = array<i64: 1, 8, 32>}, {transform_indices = @transform_1, window_bounds = array<i64: 1, 1, 8>}, {pipeline_mode = #tpu.pipeline_mode<synchronous>, transform_indices = @transform_2, window_bounds = array<i64: 32, 32>}, {pipeline_mode = #tpu.pipeline_mode<synchronous>, transform_indices = @transform_3, window_bounds = array<i64: 1, 32>}, {pipeline_mode = #tpu.pipeline_mode<synchronous>, transform_indices = @transform_4, window_bounds = array<i64: 32, 64>}, {pipeline_mode = #tpu.pipeline_mode<synchronous>, transform_indices = @transform_5, window_bounds = array<i64: 1, 64>}, {transform_indices = @transform_6, window_bounds = array<i64: 1, 8, 32>}]} {
    %c0_i32 = arith.constant 0 : i32
    %0 = arith.cmpi eq, %arg1, %c0_i32 : i32
    %1 = arith.extui %0 : i1 to i32
    %c0_i32_0 = arith.constant 0 : i32
    %2 = arith.cmpi ne, %1, %c0_i32_0 : i32
    scf.if %2 {
      %c0_31 = arith.constant 0 : index
      %c0_32 = arith.constant 0 : index
      %c0_33 = arith.constant 0 : index
      %92 = vector.load %arg2[%c0_31, %c0_32, %c0_33] : memref<1x8x32xf32, #tpu.memory_space<vmem>>, vector<1x8x32xf32>
      %93 = vector.shape_cast %92 : vector<1x8x32xf32> to vector<8x32xf32>
      %c0_34 = arith.constant 0 : index
      %c0_35 = arith.constant 0 : index
      %94 = vector.load %arg6[%c0_34, %c0_35] : memref<32x64xf32, #tpu.memory_space<vmem>>, vector<32x64xf32>
      %cst_36 = arith.constant dense<0.000000e+00> : vector<8x64xf32>
      %95 = tpu.matmul %93, %94, %cst_36 {dimension_numbers = #tpu.dot_dimension_numbers<[1], [0], [0], [1], [0, 0, 1, 1], [], []>} : vector<8x32xf32>, vector<32x64xf32>, vector<8x64xf32> -> vector<8x64xf32>
      %c0_37 = arith.constant 0 : index
      %c0_38 = arith.constant 0 : index
      %96 = vector.load %arg7[%c0_37, %c0_38] : memref<1x64xf32, #tpu.memory_space<vmem>>, vector<1x64xf32>
      %97 = vector.broadcast %96 : vector<1x64xf32> to vector<8x64xf32>
      %98 = arith.addf %95, %97 : vector<8x64xf32>
      %c0_39 = arith.constant 0 : index
      %c0_40 = arith.constant 0 : index
      %99 = vector.load %arg9[%c0_39, %c0_40] : memref<8x64xf32, #tpu.memory_space<vmem>>, vector<8x64xf32>
      tpu.vector_store %arg9[%c0_39, %c0_40], %98 {strides = array<i32>} : memref<8x64xf32, #tpu.memory_space<vmem>>, vector<8x64xf32>,
    } else {
    }
    %c8_i32 = arith.constant 8 : i32
    %3 = arith.muli %arg1, %c8_i32 : i32
    %4 = tpu.assume_multiple %3, 8 : i32
    %c0 = arith.constant 0 : index
    %5 = arith.index_cast %4 : i32 to index
    %c0_1 = arith.constant 0 : index
    %6 = vector.load %arg2[%c0, %5, %c0_1] : memref<1x8x32xf32, #tpu.memory_space<vmem>>, vector<1x8x32xf32>
    %7 = vector.shape_cast %6 : vector<1x8x32xf32> to vector<8x32xf32>
    %c0_2 = arith.constant 0 : index
    %c0_3 = arith.constant 0 : index
    %8 = vector.load %arg4[%c0_2, %c0_3] : memref<32x32xf32, #tpu.memory_space<vmem>>, vector<32x32xf32>
    %cst = arith.constant dense<0.000000e+00> : vector<8x32xf32>
    %9 = tpu.matmul %7, %8, %cst {dimension_numbers = #tpu.dot_dimension_numbers<[1], [0], [0], [1], [0, 0, 1, 1], [], []>} : vector<8x32xf32>, vector<32x32xf32>, vector<8x32xf32> -> vector<8x32xf32>
    %c0_4 = arith.constant 0 : index
    %c0_5 = arith.constant 0 : index
    %10 = vector.load %arg5[%c0_4, %c0_5] : memref<1x32xf32, #tpu.memory_space<vmem>>, vector<1x32xf32>
    %11 = vector.broadcast %10 : vector<1x32xf32> to vector<8x32xf32>
    %12 = arith.addf %9, %11 : vector<8x32xf32>
    %cst_6 = arith.constant 0.353553385 : f32
    %13 = vector.broadcast %cst_6 : f32 to vector<8x32xf32>
    %14 = arith.mulf %12, %13 : vector<8x32xf32>
    %c0_7 = arith.constant 0 : index
    %c0_8 = arith.constant 0 : index
    %15 = vector.load %arg9[%c0_7, %c0_8] : memref<8x64xf32, #tpu.memory_space<vmem>>, vector<8x64xf32>
    %16 = vector.extract_strided_slice %15 {offsets = [0, 0], sizes = [8, 32], strides = [1, 1]} : vector<8x64xf32> to vector<8x32xf32>
    %17 = vector.extract_strided_slice %15 {offsets = [0, 32], sizes = [8, 32], strides = [1, 1]} : vector<8x64xf32> to vector<8x32xf32>
    %c0_9 = arith.constant 0 : index
    %c0_10 = arith.constant 0 : index
    %c0_11 = arith.constant 0 : index
    %18 = vector.load %arg3[%c0_9, %c0_10, %c0_11] : memref<1x1x8xf32, #tpu.memory_space<vmem>>, vector<1x1x8xf32>
    %19 = vector.shape_cast %18 : vector<1x1x8xf32> to vector<1x8xf32>
    %20 = vector.extract_strided_slice %14 {offsets = [0, 0], sizes = [8, 8], strides = [1, 1]} : vector<8x32xf32> to vector<8x8xf32>
    %21 = vector.extract_strided_slice %16 {offsets = [0, 0], sizes = [8, 8], strides = [1, 1]} : vector<8x32xf32> to vector<8x8xf32>
    %22 = vector.extract_strided_slice %17 {offsets = [0, 0], sizes = [8, 8], strides = [1, 1]} : vector<8x32xf32> to vector<8x8xf32>
    %cst_12 = arith.constant dense<0.000000e+00> : vector<8x8xf32>
    %23 = tpu.matmul %20, %21, %cst_12 {dimension_numbers = #tpu.dot_dimension_numbers<[1], [1], [0], [0], [0, 0, 1, 0], [], []>} : vector<8x8xf32>, vector<8x8xf32>, vector<8x8xf32> -> vector<8x8xf32>
    %24 = vector.broadcast %19 : vector<1x8xf32> to vector<8x8xf32>
    %25 = arith.addf %23, %24 : vector<8x8xf32>
    %cst_13 = arith.constant dense<0xFF800000> : vector<8xf32>
    %26 = vector.multi_reduction <maximumf>, %25, %cst_13 [1] : vector<8x8xf32> to vector<8xf32>
    %27 = vector.shape_cast %26 : vector<8xf32> to vector<8x1xf32>
    %28 = vector.broadcast %27 : vector<8x1xf32> to vector<8x8xf32>
    %29 = arith.subf %25, %28 : vector<8x8xf32>
    %30 = math.exp %29 : vector<8x8xf32>
    %cst_14 = arith.constant dense<0.000000e+00> : vector<8xf32>
    %31 = vector.multi_reduction <add>, %30, %cst_14 [1] : vector<8x8xf32> to vector<8xf32>
    %32 = vector.shape_cast %31 : vector<8xf32> to vector<8x1xf32>
    %cst_15 = arith.constant dense<0.000000e+00> : vector<8x8xf32>
    %33 = tpu.matmul %30, %22, %cst_15 {dimension_numbers = #tpu.dot_dimension_numbers<[1], [0], [0], [1], [0, 0, 1, 1], [], []>} : vector<8x8xf32>, vector<8x8xf32>, vector<8x8xf32> -> vector<8x8xf32>
    %34 = tpu.reciprocal %32 {approx = true} : vector<8x1xf32> -> vector<8x1xf32>
    %35 = vector.broadcast %34 : vector<8x1xf32> to vector<8x8xf32>
    %36 = arith.mulf %33, %35 : vector<8x8xf32>
    %37 = vector.extract_strided_slice %14 {offsets = [0, 8], sizes = [8, 8], strides = [1, 1]} : vector<8x32xf32> to vector<8x8xf32>
    %38 = vector.extract_strided_slice %16 {offsets = [0, 8], sizes = [8, 8], strides = [1, 1]} : vector<8x32xf32> to vector<8x8xf32>
    %39 = vector.extract_strided_slice %17 {offsets = [0, 8], sizes = [8, 8], strides = [1, 1]} : vector<8x32xf32> to vector<8x8xf32>
    %cst_16 = arith.constant dense<0.000000e+00> : vector<8x8xf32>
    %40 = tpu.matmul %37, %38, %cst_16 {dimension_numbers = #tpu.dot_dimension_numbers<[1], [1], [0], [0], [0, 0, 1, 0], [], []>} : vector<8x8xf32>, vector<8x8xf32>, vector<8x8xf32> -> vector<8x8xf32>
    %41 = vector.broadcast %19 : vector<1x8xf32> to vector<8x8xf32>
    %42 = arith.addf %40, %41 : vector<8x8xf32>
    %cst_17 = arith.constant dense<0xFF800000> : vector<8xf32>
    %43 = vector.multi_reduction <maximumf>, %42, %cst_17 [1] : vector<8x8xf32> to vector<8xf32>
    %44 = vector.shape_cast %43 : vector<8xf32> to vector<8x1xf32>
    %45 = vector.broadcast %44 : vector<8x1xf32> to vector<8x8xf32>
    %46 = arith.subf %42, %45 : vector<8x8xf32>
    %47 = math.exp %46 : vector<8x8xf32>
    %cst_18 = arith.constant dense<0.000000e+00> : vector<8xf32>
    %48 = vector.multi_reduction <add>, %47, %cst_18 [1] : vector<8x8xf32> to vector<8xf32>
    %49 = vector.shape_cast %48 : vector<8xf32> to vector<8x1xf32>
    %cst_19 = arith.constant dense<0.000000e+00> : vector<8x8xf32>
    %50 = tpu.matmul %47, %39, %cst_19 {dimension_numbers = #tpu.dot_dimension_numbers<[1], [0], [0], [1], [0, 0, 1, 1], [], []>} : vector<8x8xf32>, vector<8x8xf32>, vector<8x8xf32> -> vector<8x8xf32>
    %51 = tpu.reciprocal %49 {approx = true} : vector<8x1xf32> -> vector<8x1xf32>
    %52 = vector.broadcast %51 : vector<8x1xf32> to vector<8x8xf32>
    %53 = arith.mulf %50, %52 : vector<8x8xf32>
    %54 = vector.extract_strided_slice %14 {offsets = [0, 16], sizes = [8, 8], strides = [1, 1]} : vector<8x32xf32> to vector<8x8xf32>
    %55 = vector.extract_strided_slice %16 {offsets = [0, 16], sizes = [8, 8], strides = [1, 1]} : vector<8x32xf32> to vector<8x8xf32>
    %56 = vector.extract_strided_slice %17 {offsets = [0, 16], sizes = [8, 8], strides = [1, 1]} : vector<8x32xf32> to vector<8x8xf32>
    %cst_20 = arith.constant dense<0.000000e+00> : vector<8x8xf32>
    %57 = tpu.matmul %54, %55, %cst_20 {dimension_numbers = #tpu.dot_dimension_numbers<[1], [1], [0], [0], [0, 0, 1, 0], [], []>} : vector<8x8xf32>, vector<8x8xf32>, vector<8x8xf32> -> vector<8x8xf32>
    %58 = vector.broadcast %19 : vector<1x8xf32> to vector<8x8xf32>
    %59 = arith.addf %57, %58 : vector<8x8xf32>
    %cst_21 = arith.constant dense<0xFF800000> : vector<8xf32>
    %60 = vector.multi_reduction <maximumf>, %59, %cst_21 [1] : vector<8x8xf32> to vector<8xf32>
    %61 = vector.shape_cast %60 : vector<8xf32> to vector<8x1xf32>
    %62 = vector.broadcast %61 : vector<8x1xf32> to vector<8x8xf32>
    %63 = arith.subf %59, %62 : vector<8x8xf32>
    %64 = math.exp %63 : vector<8x8xf32>
    %cst_22 = arith.constant dense<0.000000e+00> : vector<8xf32>
    %65 = vector.multi_reduction <add>, %64, %cst_22 [1] : vector<8x8xf32> to vector<8xf32>
    %66 = vector.shape_cast %65 : vector<8xf32> to vector<8x1xf32>
    %cst_23 = arith.constant dense<0.000000e+00> : vector<8x8xf32>
    %67 = tpu.matmul %64, %56, %cst_23 {dimension_numbers = #tpu.dot_dimension_numbers<[1], [0], [0], [1], [0, 0, 1, 1], [], []>} : vector<8x8xf32>, vector<8x8xf32>, vector<8x8xf32> -> vector<8x8xf32>
    %68 = tpu.reciprocal %66 {approx = true} : vector<8x1xf32> -> vector<8x1xf32>
    %69 = vector.broadcast %68 : vector<8x1xf32> to vector<8x8xf32>
    %70 = arith.mulf %67, %69 : vector<8x8xf32>
    %71 = vector.extract_strided_slice %14 {offsets = [0, 24], sizes = [8, 8], strides = [1, 1]} : vector<8x32xf32> to vector<8x8xf32>
    %72 = vector.extract_strided_slice %16 {offsets = [0, 24], sizes = [8, 8], strides = [1, 1]} : vector<8x32xf32> to vector<8x8xf32>
    %73 = vector.extract_strided_slice %17 {offsets = [0, 24], sizes = [8, 8], strides = [1, 1]} : vector<8x32xf32> to vector<8x8xf32>
    %cst_24 = arith.constant dense<0.000000e+00> : vector<8x8xf32>
    %74 = tpu.matmul %71, %72, %cst_24 {dimension_numbers = #tpu.dot_dimension_numbers<[1], [1], [0], [0], [0, 0, 1, 0], [], []>} : vector<8x8xf32>, vector<8x8xf32>, vector<8x8xf32> -> vector<8x8xf32>
    %75 = vector.broadcast %19 : vector<1x8xf32> to vector<8x8xf32>
    %76 = arith.addf %74, %75 : vector<8x8xf32>
    %cst_25 = arith.constant dense<0xFF800000> : vector<8xf32>
    %77 = vector.multi_reduction <maximumf>, %76, %cst_25 [1] : vector<8x8xf32> to vector<8xf32>
    %78 = vector.shape_cast %77 : vector<8xf32> to vector<8x1xf32>
    %79 = vector.broadcast %78 : vector<8x1xf32> to vector<8x8xf32>
    %80 = arith.subf %76, %79 : vector<8x8xf32>
    %81 = math.exp %80 : vector<8x8xf32>
    %cst_26 = arith.constant dense<0.000000e+00> : vector<8xf32>
    %82 = vector.multi_reduction <add>, %81, %cst_26 [1] : vector<8x8xf32> to vector<8xf32>
    %83 = vector.shape_cast %82 : vector<8xf32> to vector<8x1xf32>
    %cst_27 = arith.constant dense<0.000000e+00> : vector<8x8xf32>
    %84 = tpu.matmul %81, %73, %cst_27 {dimension_numbers = #tpu.dot_dimension_numbers<[1], [0], [0], [1], [0, 0, 1, 1], [], []>} : vector<8x8xf32>, vector<8x8xf32>, vector<8x8xf32> -> vector<8x8xf32>
    %85 = tpu.reciprocal %83 {approx = true} : vector<8x1xf32> -> vector<8x1xf32>
    %86 = vector.broadcast %85 : vector<8x1xf32> to vector<8x8xf32>
    %87 = arith.mulf %84, %86 : vector<8x8xf32>
    %88 = tpu.concatenate %36, %53, %70, %87 in 1 : vector<8x8xf32>, vector<8x8xf32>, vector<8x8xf32>, vector<8x8xf32> -> vector<8x32xf32>
    %c0_28 = arith.constant 0 : index
    %c0_29 = arith.constant 0 : index
    %c0_30 = arith.constant 0 : index
    %89 = vector.load %arg8[%c0_28, %c0_29, %c0_30] : memref<1x8x32xf32, #tpu.memory_space<vmem>>, vector<1x8x32xf32>
    %90 = vector.shape_cast %89 : vector<1x8x32xf32> to vector<8x32xf32>
    %91 = vector.shape_cast %88 : vector<8x32xf32> to vector<1x8x32xf32>
    tpu.vector_store %arg8[%c0_28, %c0_29, %c0_30], %91 {strides = array<i32>} : memref<1x8x32xf32, #tpu.memory_space<vmem>>, vector<1x8x32xf32>,
    return
  }
  func.func @transform_0(%arg0: i32, %arg1: i32) -> (i32, i32, i32) {
    %c0_i32 = arith.constant 0 : i32
    %c0_i32_0 = arith.constant 0 : i32
    %c0_i32_1 = arith.constant 0 : i32
    return %arg0, %c0_i32, %c0_i32_0 : i32, i32, i32
  }
  func.func @transform_1(%arg0: i32, %arg1: i32) -> (i32, i32, i32) {
    %c0_i32 = arith.constant 0 : i32
    %c0_i32_0 = arith.constant 0 : i32
    %c0_i32_1 = arith.constant 0 : i32
    return %arg0, %c0_i32, %c0_i32_0 : i32, i32, i32
  }
  func.func @transform_2(%arg0: i32, %arg1: i32) -> (i32, i32) {
    %c0_i32 = arith.constant 0 : i32
    %c0_i32_0 = arith.constant 0 : i32
    %c0_i32_1 = arith.constant 0 : i32
    return %c0_i32, %c0_i32_0 : i32, i32
  }
  func.func @transform_3(%arg0: i32, %arg1: i32) -> (i32, i32) {
    %c0_i32 = arith.constant 0 : i32
    %c0_i32_0 = arith.constant 0 : i32
    %c0_i32_1 = arith.constant 0 : i32
    return %c0_i32, %c0_i32_0 : i32, i32
  }
  func.func @transform_4(%arg0: i32, %arg1: i32) -> (i32, i32) {
    %c0_i32 = arith.constant 0 : i32
    %c0_i32_0 = arith.constant 0 : i32
    %c0_i32_1 = arith.constant 0 : i32
    return %c0_i32, %c0_i32_0 : i32, i32
  }
  func.func @transform_5(%arg0: i32, %arg1: i32) -> (i32, i32) {
    %c0_i32 = arith.constant 0 : i32
    %c0_i32_0 = arith.constant 0 : i32
    %c0_i32_1 = arith.constant 0 : i32
    return %c0_i32, %c0_i32_0 : i32, i32
  }
  func.func @transform_6(%arg0: i32, %arg1: i32) -> (i32, i32, i32) {
    %c0_i32 = arith.constant 0 : i32
    %c0_i32_0 = arith.constant 0 : i32
    return %arg0, %arg1, %c0_i32 : i32, i32, i32
  }
}

</mosaic_0001>

<bundles_post_ra>
// kernel: tpu_custom_call.1
= control target key start
LH: loop header
LB: loop body
LE: loop exit
PB: predicated region body
PF: predicated region fallthrough
CT: control target
= control target key end

     0   :  { %s1469_s0 = inlined_call_operand.hbm [shape: f32[2,8,32], index: 0, kind: input, shape index: {}]   ;;  %s1470_s1 = inlined_call_operand.hbm [shape: f32[2,1,8], index: 1, kind: input, shape index: {}]   ;;  %s1471_s2 = inlined_call_operand.hbm [shape: f32[32,32], index: 2, kind: input, shape index: {}]   ;;  %s1472_s3 = inlined_call_operand.vmem [shape: f32[1,32], index: 3, kind: input, shape index: {}]   ;;  %s1473_s4 = inlined_call_operand.hbm [shape: f32[32,64], index: 4, kind: input, shape index: {}]   ;;  %s1474_s5 = inlined_call_operand.vmem [shape: f32[1,64], index: 5, kind: input, shape index: {}]   ;;  %s1475_s6 = inlined_call_operand.hbm [shape: f32[2,8,32], index: 6, kind: output, shape index: {}]  }
   0x1   :  { %1480 = sst [smem:[#allocation22_spill]] %s1471_s2 }
   0x2   :  { %1481 = sst [smem:[#allocation23_spill]] %s1473_s4 }
   0x3   :  { %11 = vsyncpa [#allocation4], 0 }
   0x4   :  { %13 = vsyncpa [#allocation4 + $0x1], 0 }
   0x5   :  { %14 = vsyncpa [#allocation7], 0 }
   0x6   :  { %16 = vsyncpa [#allocation7 + $0x1], 0 }
   0x7   :  { %17 = vsyncpa [#allocation10], 0 }
   0x8   :  { %18 = vsyncpa [#allocation5], 0 }
   0x9   :  { %20 = vsyncpa [#allocation5 + $0x1], 0  ;;  %s1259_s21 = smov 0   ;;  %s1261_s22 = smov 0  }
   0xa   :  { %s1263_s23 = smov 0   ;;  %s1265_s24 = smov 0  }
   0xb   :  { %s1267_s25 = smov 0   ;;  %s1269_s26 = smov 0  }
   0xc LB: > { %1482 = sst [smem:[#allocation17_spill]] %s1188_s21  ;;  %s1290_s27 = sadd.s32 4294967295, %s1208_s26   ;;  %s1208_s26 = sphi %s1269_s26, %s26_s26   ;;  %s1204_s25 = sphi %s1267_s25, %s1502_s25   ;;  %s1200_s24 = sphi %s1265_s24, %s1501_s24   ;;  %s1196_s23 = sphi %s1263_s23, %s1497_s23   ;;  %s1192_s22 = sphi %s1261_s22, %s1500_s22   ;;  %s1188_s21 = sphi %s1259_s21, %s1499_s21  }
   0xd   : > { %1483 = sst [smem:[#allocation18_spill]] %s1196_s23  ;;  %p846_p0 = scmp.ge.s32.totalorder %s1208_s26, 1 }
   0xe   : > { %p59_p1 = scmp.eq.s32.totalorder %s1290_s27, 0  ;;  %p207_p2 = scmp.lt.s32.totalorder %s1208_s26, 3 }
   0xf   : > { %s1484_s2 = sld [smem:[#allocation22_spill]]  ;;  %s1210_s8 = smov [#allocation8]  }
  0x10   : > { %p1298_p3 = pnand %p846_p0, %p207_p2  ;;  %s220_s9 = sshll.u32 %s1210_s8, 4  ;;  %s221_s9 = int_to_ptr.vmem [resolvable:$true] %s220_s9 }
  0x11   : > { %p849_p6 = scmp.ge.s32.totalorder %s1208_s26, 2  ;;  %s1486_s4 = sld [smem:[#allocation23_spill]] }
  0x12   : > { %p889_p4 = pneg %p1298_p3  ;;  %s1211_s13 = smov 128  }
  0x13   : > { %s1212_s14 = smov 8   ;;  %s1213_s15 = smov [#allocation9]  }
  0x14   : > { %p890_p5 = pnand %p889_p4, %p59_p1  ;;  %s237_s16 = sshll.u32 %s1213_s15, 4  ;;  %s238_s16 = int_to_ptr.vmem [resolvable:$true] %s237_s16 }
  0x15   : > { %s218_s30 = sshll.u32 %s1484_s2, 4  ;;  %s845_s17 = sadd.s32 4294967294, %s1208_s26   ;;  %s219_s30 = int_to_ptr.hbm [resolvable:$true] %s218_s30 }
  0x16   : > { %892 = dma.hbm_to_vmem [thread:$0]  (!%p890_p5), %s219_s30, 512, %s221_s9, [#allocation7], %s1211_s13, %s1211_s13, %s1212_s14  }
  0x17   : > { %s235_s12 = sshll.u32 %s1486_s4, 4  ;;  %s38_s18 = sadd.s32 1, %s1204_s25  ;;  %s236_s12 = int_to_ptr.hbm [resolvable:$true] %s235_s12 }
  0x18   : > { %895 = dma.hbm_to_vmem [thread:$0]  (!%p890_p5), %s236_s12, 512, %s238_s16, [#allocation10], %s1211_s13, %s1211_s13, %s1212_s14  }
  0x19   : > { %p40_p7 = scmp.ge.s32.totalorder %s38_s18, 2  ;;  %s45_s19 = sadd.s32 1, %s1196_s23 }
  0x1a   : > { %p52_p8 = scmp.ne.s32.totalorder %s1196_s23, %s1192_s22  ;;  %p53_p9 = scmp.eq.s32.totalorder %s1208_s26, 0 }
  0x1b   : > { %s1504_s18 = smov (%p40_p7, %s38_s18), 0  ;;  %p58_p11 = scmp.ne.s32.totalorder %s1192_s22, %s1188_s21 }
  0x1c   : > { %1487 = sst [smem:[#allocation19_spill]] %s1504_s18  ;;  %p1318_p10 = por %p53_p9, %p52_p8 }
  0x1d   : > { %s42_s28 = ssub.s32 %s1204_s25, %s1504_s18  ;;  %p194_p12 = scmp.eq.s32.totalorder %s1290_s27, 1 }
  0x1e   : > { %p43_p13 = scmp.eq.s32.totalorder %s42_s28, 0  ;;  %p1329_p0 = por %p59_p1, %p58_p11 }
  0x1f   : > { %p1333_p2 = por %p194_p12, %p52_p8  ;;  %p200_p4 = scmp.eq.s32.totalorder %s845_s17, 1 }
  0x20   : > { %s1338_s8 = scalar_select %p43_p13, %s1196_s23, %s45_s19  }
  0x21   : > { %p1340_p5 = por %p200_p4, %p58_p11  ;;  %p909_p7 = scmp.lt.s32.totalorder %s1208_s26, 2 }
  0x22   : > { %1491 = sst [smem:[#allocation20_spill]] %s1338_s8  ;;  %s254_s10 = sand.u32 1, %s1196_s23  }
  0x23   : > { %s1492_s9 = scalar_select %p1340_p5, 1, 0 }
  0x24   : > { %s851_s11 = sshll.u32 %s1204_s25, 3  ;;  %s850_s12 = sshll.u32 %s254_s10, 3 }
  0x25   : > { %1493 = sst [smem:[#allocation21_spill]] %s1492_s9  ;;  %s262_s15 = scalar_lea.hbm %s1469_s0, %s851_s11 }
  0x26   : > { %s264_s16 = sshll.u32 %s262_s15, 4  ;;  %s258_s28 = scalar_lea.vmem [#allocation3], %s850_s12  ;;  %s265_s16 = int_to_ptr.hbm [resolvable:$true] %s264_s16 }
  0x27   : > { %s266_s2 = sshll.u32 %s258_s28, 4  ;;  %p897_p8 = pnand %p909_p7, %p1318_p10  ;;  %s267_s2 = int_to_ptr.vmem [resolvable:$true] %s266_s2 }
  0x28   : > { %s273_s17 = sand.u32 1, %s1208_s26   ;;  %s279_s18 = scalar_lea.hbm %s1470_s1, %s1204_s25 }
  0x29   : > { %s255_s8 = scalar_lea.sflag [#allocation4], %s254_s10  ;;  %s281_s23 = sshll.u32 %s279_s18, 4  ;;  %s282_s23 = int_to_ptr.hbm [resolvable:$true] %s281_s23 }
  0x2a   : > { %899 = dma.hbm_to_vmem [thread:$0]  (!%p897_p8), %s265_s16, 128, %s267_s2, %s255_s8  }
  0x2b   : > { %s276_s9 = scalar_lea.vmem [#allocation6], %s254_s10  ;;  %s274_s11 = scalar_lea.sflag [#allocation7], %s273_s17 }
  0x2c   : > { %s283_s21 = sshll.u32 %s276_s9, 4  ;;  %292 = sbr.rel (%p1298_p3) target bundleno = 1023 (0x3ff), region = 44  ;;  %s284_s21 = int_to_ptr.vmem [resolvable:$true] %s283_s21 }
  0x2d   : > { %902 = dma.hbm_to_vmem [thread:$0]  (!%p897_p8), %s282_s23, 16, %s284_s21, %s274_s11  }
  0x2e   : > { %s1360_s20 = sand.u32 (!%p1298_p3), 1, %s1192_s22  }
  0x2f   : > { %s853_s4 = sshll.u32 (!%p1298_p3), %s1360_s20, 3  ;;  %s295_s12 = scalar_lea.sflag (!%p1298_p3), [#allocation4], %s1360_s20 }
  0x30   : > { %s298_s2 = scalar_lea.vmem (!%p1298_p3), [#allocation3], %s853_s4 }
  0x31   : > { %1167 = dma.done.wait (%p1329_p0), %s295_s12, 128  }
  0x32   : > { %1169 = vsyncadd (%p1329_p0), %s295_s12, 4294967168  ;;  %s304_s21 = sand.u32 1, %s1290_s27   ;;  %s307_s7 = scalar_lea.vmem [#allocation6], %s1360_s20 }
  0x33   : > { %s305_s23 = scalar_lea.sflag [#allocation7], %s304_s21 }
  0x34   : > { %1171 = dma.done.wait (%p1329_p0), %s305_s23, 16  }
  0x35   : > { %1173 = vsyncadd (%p1329_p0), %s305_s23, 4294967280 }
  0x36   : > { %1175 = dma.done.wait (%p59_p1), [#allocation7], 512  }
  0x37   : > { %1177 = vsyncadd (%p59_p1), [#allocation7], 4294966784 }
  0x38   : > { %1179 = dma.done.wait (%p59_p1), [#allocation10], 512  }
  0x39   : > { %1181 = vsyncadd (%p59_p1), [#allocation10], 4294966784  ;;  %v359_v0 = vld [vmem:[#allocation9 + $0x18] sm:$0xff]  ;;  %v358_v1 = vld [vmem:[#allocation9 + $0x10] sm:$0xff]  ;;  %vm364_vm0 = vcmask 261120   ;;  %vm388_vm1 = vcmask 523264  }
  0x3a   : > { %380 = vmatpush.msra.mxu0 %v359_v0  ;;  %v396_v2 = vld [vmem:[#allocation8 + $0x18] sm:$0xff]  ;;  %v357_v3 = vld [vmem:[#allocation9 + $0x8] sm:$0xff]  ;;  %v395_v4 = vld [vmem:[#allocation8 + $0x10] sm:$0xff]  ;;  %vm431_vm2 = vcmask 64512   ;;  %s1214_s9 = smov 104   ;;  %s1215_s10 = smov 120  }
  0x3b   : > { %417 = vmatpush.msra.mxu1 %v396_v2  ;;  %v394_v5 = vld [vmem:[#allocation8 + $0x8] sm:$0xff]  ;;  %v356_v6 = vld [vmem:[#allocation9] sm:$0xff]  ;;  %s1216_s13 = smov 112   ;;  %s1217_s14 = smov 96   ;;  %vm703_vm3 = vcmask 130048   ;;  %vm705_vm4 = vcmask 195584  }
  0x3c   : > { %381 = vmatpush.msra.mxu0 %v358_v1  ;;  %v355_v7 = vld [vmem:[%s298_s2] sm:$0xff]  ;;  %v393_v8 = vld [vmem:[#allocation8] sm:$0xff]  ;;  %s1218_s15 = smov 88   ;;  %s1219_s16 = smov 80  }
  0x3d   : > { %418 = vmatpush.msra.mxu1 %v395_v4  ;;  %v975_v9 = vld [vmem:[%s1474_s5] ss:$0 sm:$0xff]  ;;  %s1220_s28 = smov 72   ;;  %s1221_s17 = smov 16  }
  0x3e   : > { %382 = vmatpush.msra.mxu0 %v357_v3  ;;  %v976_v12 = vld [vmem:[%s1472_s3] ss:$0 sm:$0xff]  ;;  %s1222_s19 = smov 8   ;;  %s1223_s11 = smov 24  }
  0x3f   : > { %419 = vmatpush.msra.mxu1 %v394_v5  ;;  %v977_v22 = vld [vmem:[%s307_s7] ss:$0 sm:$0xff]  ;;  %s872_s12 = sshll.u32 %s1200_s24, 3  ;;  %s350_s7 = scalar_lea.vmem [#allocation11], %s853_s4 }
  0x40   : > { %383 = vmatpush.msra.mxu0 %v356_v6  ;;  %s720_s23 = scalar_lea.hbm %s1475_s6, %s872_s12  ;;  %s722_s27 = sshll.u32 %s350_s7, 4  ;;  %s723_s27 = int_to_ptr.vmem [resolvable:$true] %s722_s27 }
  0x41   : > { %857 = vmatmul.msk.f32.vlgmr.msra.gmra.mxu0 %vm364_vm0, %v355_v7  ;;  %420 = vmatpush.msra.mxu1 %v393_v8  ;;  %s724_s18 = sshll.u32 %s720_s23, 4  ;;  %s709_s24 = scalar_lea.sflag [#allocation5], %s1360_s20  ;;  %s725_s18 = int_to_ptr.hbm [resolvable:$true] %s724_s18 }
  0x42   : > { %858 = vmatmul.msk.f32.vlgmr.msra.gmra.mxu1 %vm364_vm0, %v355_v7  ;;  %s1128_s29 = sshra.s32 %s725_s18, 4  ;;  %s1129_s29 = int_to_ptr.hbm [resolvable:$true] %s1128_s29 }
  0x43   : > { %s1130_s8 = scalar_lea.hbm %s1129_s29, 8  ;;  %p1135_p10 = scmp.lt.s32.totalorder %s1129_s29, %s1475_s6 }
  0x44   : > { %p1131_p1 = scmp.ne.s32.totalorder %s1129_s29, %s1130_s8 }
  0x46   : > { %p1132_p3 = pnand %p1131_p1, %p1333_p2 }
  0x48   : > { %p1133_p9 = pneg %p1132_p3 }
  0xbe   : > { %v385_v10 = vpop.f32.mrf.mxu0 }
  0xbf   : > { %v386_v11 = vadd.f32 %v975_v9, %v385_v10  ;;  %v422_v13 = vpop.f32.mrf.mxu1 }
  0xc0   : > { %v423_v14 = vadd.f32 %v976_v12, %v422_v13 }
  0xc1   : > { %389 = vst.msk [vmem:[#allocation2] sm:$0xff] %vm388_vm1, %v386_v11 }
  0xc2   : > { %v425_v16 = vmul.f32 0.35355338, %v423_v14 }
  0xc8   : > { %v1392_v15 = vld [vmem:[#allocation2] sm:$0xff] }
  0xc9   : > { %627 = vrot.lane.b32.xlu2 %v1392_v15, %s1214_s9  ;;  %497 = vrot.lane.b32.xlu1 %v1392_v15, %s1215_s10 }
  0xca   : > { %859 = vmatpush.xpose.msk.msra.mxu2 %vm431_vm2, %v1392_v15 }
  0xcd   : > { %860 = vmatmul.msk.f32.vlgmr.msra.gmra.mxu2 %vm431_vm2, %v425_v16 }
  0xd1   : > { %625 = vrot.lane.b32.xlu2 %v425_v16, %s1214_s9  ;;  %495 = vrot.lane.b32.xlu1 %v425_v16, %s1215_s10  ;;  %s1134_s10 = scalar_lea.hbm %s1475_s6, 16 }
  0xd2   : > { %p1136_p11 = scmp.lt.s32.totalorder %s1134_s10, %s1130_s8 }
  0xd4   : > { %p1137_p12 = por %p1136_p11, %p1135_p10 }
  0xd6   : > { %p1138_p13 = pnand %p1137_p12, %p1133_p9 }
  0xd9   : > { %560 = vrot.lane.b32.xlu2 %v425_v16, %s1216_s13  ;;  %562 = vrot.lane.b32.xlu1 %v1392_v15, %s1216_s13 }
 0x123   : > { %v628_v17 = vpop.permute.xlu2 %627 }
 0x12b   : > { %v626_v20 = vpop.permute.xlu2 %625 }
 0x133   : > { %v561_v23 = vpop.permute.xlu2 %560 }
 0x13b   : > { %v498_v18 = vpop.permute.xlu1 %497 }
 0x143   : > { %v496_v19 = vpop.permute.xlu1 %495 }
 0x14b   : > { %v563_v21 = vpop.permute.xlu1 %562 }
 0x14c   : > { %865 = vmatpush.xpose.msk.msrb.mxu0 %vm431_vm2, %v563_v21 }
 0x14f   : > { %866 = vmatmul.msk.f32.vlgmr.msrb.gmra.mxu0 %vm431_vm2, %v561_v23 }
 0x150   : > { %v455_v24 = vpop.f32.mrf.mxu2 }
 0x151   : > { %v456_v25 = vadd.f32 %v977_v22, %v455_v24 }
 0x153   : > { %v458_v26 = vsel %vm431_vm2, %v456_v25, -inf }
 0x154   : > { %459 = vmax.xlane.f32.xlu0 %v458_v26 }
 0x168   : > { %467 = vrot.lane.b32.xlu0 %v1392_v15, %s1217_s14 }
 0x170   : > { %532 = vrot.lane.b32.xlu0 %v1392_v15, %s1218_s15 }
 0x1c7   : > { %v460_v27 = vpop.xlane.xlu0 %459 }
 0x1c8   : > { %v461_v29 = vsub.f32 %v456_v25, %v460_v27 }
 0x1ca   : > { %v462_v32 = vmul.f32 1.442695, %v461_v29 }
 0x1cc   : > { %v585_v28 = vpop.f32.mrf.mxu0  ;;  %978 = vpow2.f32 %v462_v32 }
 0x1cd   : > { %v586_v30 = vadd.f32 %v977_v22, %v585_v28 }
 0x1cf   : > { %v588_v31 = vsel %vm431_vm2, %v586_v30, -inf }
 0x1d0   : > { %589 = vmax.xlane.f32.xlu0 %v588_v31 }
 0x1d2   : > { %v979_v34 = vpop.eup %978 }
 0x1d3   : > { %v464_v48 = vsel %vm431_vm2, %v979_v34, 0.0 }
 0x1da   : > { %v468_v33 = vpop.permute.xlu0 %467 }
 0x1db   : > { %488 = vmatpush.msra.mxu3 %v468_v33 }
 0x1dc   : > { %861 = vmatmul.msk.f32.vlgmr.msra.gmra.mxu3 %vm431_vm2, %v979_v34 }
 0x1dd   : > { %862 = vmatpush.xpose.msk.msrb.mxu3 %vm431_vm2, %v498_v18 }
 0x1e1   : > { %868 = vmatpush.xpose.msk.msra.mxu3 %vm431_vm2, %v628_v17 }
 0x1e2   : > { %v533_v35 = vpop.permute.xlu0 %532 }
 0x1e3   : > { %553 = vmatpush.msrb.mxu2 %v533_v35 }
 0x1e4   : > { %863 = vmatmul.msk.f32.vlgmr.msrb.gmra.mxu3 %vm431_vm2, %v496_v19 }
 0x1ec   : > { %869 = vmatmul.msk.f32.vlgmr.msra.gmra.mxu3 %vm431_vm2, %v626_v20 }
 0x243   : > { %v590_v36 = vpop.xlane.xlu0 %589 }
 0x244   : > { %v591_v37 = vsub.f32 %v586_v30, %v590_v36 }
 0x246   : > { %v592_v38 = vmul.f32 1.442695, %v591_v37 }
 0x248   : > { %980 = vpow2.f32 %v592_v38 }
 0x24e   : > { %v981_v39 = vpop.eup %980 }
 0x24f   : > { %v594_v40 = vsel %vm431_vm2, %v981_v39, 0.0 }
 0x250   : > { %595 = vadd.xlane.f32.xlu0 %v594_v40 }
 0x25f   : > { %v1414_v41 = vpop.f32.mrf.mxu3 }
 0x267   : > { %v520_v42 = vpop.f32.mrf.mxu3 }
 0x268   : > { %v521_v43 = vadd.f32 %v977_v22, %v520_v42 }
 0x26a   : > { %v523_v44 = vsel %vm431_vm2, %v521_v43, -inf }
 0x26b   : > { %524 = vmax.xlane.f32.xlu1 %v523_v44 }
 0x26f   : > { %v650_v45 = vpop.f32.mrf.mxu3 }
 0x270   : > { %v651_v46 = vadd.f32 %v977_v22, %v650_v45 }
 0x272   : > { %v653_v47 = vsel %vm431_vm2, %v651_v46, -inf }
 0x273   : > { %654 = vmax.xlane.f32.xlu2 %v653_v47 }
 0x284   : > { %597 = vrot.lane.b32.xlu1 %v1392_v15, %s1219_s16 }
 0x28b   : > { %662 = vrot.lane.b32.xlu2 %v1392_v15, %s1220_s28 }
 0x2ae   : > { %465 = vadd.xlane.f32.xlu1 %v464_v48 }
 0x2c3   : > { %v596_v61 = vpop.xlane.xlu0 %595 }
 0x2de   : > { %v525_v49 = vpop.xlane.xlu1 %524 }
 0x2df   : > { %v526_v50 = vsub.f32 %v521_v43, %v525_v49 }
 0x2e1   : > { %v527_v51 = vmul.f32 1.442695, %v526_v50 }
 0x2e3   : > { %982 = vpow2.f32 %v527_v51 }
 0x2e6   : > { %v655_v52 = vpop.xlane.xlu2 %654 }
 0x2e7   : > { %v656_v53 = vsub.f32 %v651_v46, %v655_v52 }
 0x2e9   : > { %v983_v54 = vpop.eup %982  ;;  %v657_v55 = vmul.f32 1.442695, %v656_v53 }
 0x2ea   : > { %864 = vmatmul.msk.f32.vlgmr.msrb.gmra.mxu2 %vm431_vm2, %v983_v54  ;;  %v529_v56 = vsel %vm431_vm2, %v983_v54, 0.0 }
 0x2eb   : > { %984 = vpow2.f32 %v657_v55  ;;  %530 = vadd.xlane.f32.xlu0 %v529_v56 }
 0x2ec   : > { %986 = vrcp.f32 %v596_v61 }
 0x2ee   : > { %v663_v57 = vpop.permute.xlu2 %662 }
 0x2ef   : > { %683 = vmatpush.msra.mxu2 %v663_v57 }
 0x2f1   : > { %v985_v58 = vpop.eup %984 }
 0x2f2   : > { %870 = vmatmul.msk.f32.vlgmr.msra.gmra.mxu2 %vm431_vm2, %v985_v58  ;;  %v659_v59 = vsel %vm431_vm2, %v985_v58, 0.0  ;;  %v987_v63 = vpop.eup %986 }
 0x2f3   : > { %660 = vadd.xlane.f32.xlu2 %v659_v59 }
 0x2f6   : > { %v598_v60 = vpop.permute.xlu1 %597 }
 0x2f7   : > { %618 = vmatpush.msrb.mxu1 %v598_v60 }
 0x2f8   : > { %867 = vmatmul.msk.f32.vlgmr.msrb.gmra.mxu1 %vm431_vm2, %v981_v39 }
 0x321   : > { %v466_v9 = vpop.xlane.xlu1 %465 }
 0x35e   : > { %v531_v62 = vpop.xlane.xlu0 %530 }
 0x35f   : > { %988 = vrcp.f32 %v531_v62 }
 0x365   : > { %v989_v4 = vpop.eup %988 }
 0x366   : > { %v661_v3 = vpop.xlane.xlu2 %660 }
 0x367   : > { %990 = vrcp.f32 %v661_v3 }
 0x368   : > { %992 = vrcp.f32 %v466_v9 }
 0x36d   : > { %v555_v2 = vpop.f32.mrf.mxu2  ;;  %v991_v7 = vpop.eup %990 }
 0x36e   : > { %v559_v5 = vmul.f32 %v989_v4, %v555_v2  ;;  %v993_v11 = vpop.eup %992 }
 0x36f   : > { %v494_v13 = vmul.f32 %v993_v11, %v1414_v41 }
 0x375   : > { %v620_v0 = vpop.f32.mrf.mxu1  ;;  %v685_v6 = vpop.f32.mrf.mxu2 }
 0x376   : > { %v624_v1 = vmul.f32 %v987_v63, %v620_v0  ;;  %v689_v8 = vmul.f32 %v991_v7, %v685_v6 }
 0x378   : > { %695 = vrot.lane.b32.xlu0 %v624_v1, %s1221_s17 }
 0x380   : > { %691 = vrot.lane.b32.xlu0 %v559_v5, %s1222_s19 }
 0x388   : > { %699 = vrot.lane.b32.xlu0 %v689_v8, %s1223_s11 }
 0x3ea   : > { %v696_v10 = vpop.permute.xlu0 %695 }
 0x3f2   : > { %v692_v12 = vpop.permute.xlu0 %691 }
 0x3f3   : > { %v702_v14 = vsel %vm431_vm2, %v494_v13, %v692_v12 }
 0x3f4   : > { %v704_v15 = vsel %vm703_vm3, %v702_v14, %v696_v10 }
 0x3fa   : > { %v700_v16 = vpop.permute.xlu0 %699 }
 0x3fb   : > { %v706_v17 = vsel %vm705_vm4, %v704_v15, %v700_v16 }
 0x3fc   : > { %707 = vst.msk [vmem:[%s350_s7] sm:$0xff] %vm364_vm0, %v706_v17 }
 0x3fd   : > { %1141 = shalt.err (!%p1138_p13)
}
 0x3fe   : > { %887 = dma.vmem_to_hbm [thread:$0]  (%p1333_p2), %s723_s27, 128, %s725_s18, %s709_s24  }
 0x3ff PF: > { %s1494_s20 = sld [smem:[#allocation17_spill]]  ;;  %p904_p0 = pnand %p849_p6, %p1340_p5 }
 0x401   : > { %p905_p4 = pneg %p904_p0 }
 0x405   : > { %s736_s16 = sand.u32 1, %s1494_s20  }
 0x406   : > { %s737_s28 = scalar_lea.sflag [#allocation5], %s736_s16 }
 0x407   : > { %1183 = dma.done.wait (%p905_p4), %s737_s28, 128  }
 0x408   : > { %1185 = vsyncadd (%p905_p4), %s737_s28, 4294967168  ;;  %s26_s26 = sadd.s32 1, %s1208_s26   ;;  %s1496_s17 = sld [smem:[#allocation18_spill]] }
 0x409   : > { %p23_p7 = scmp.ge.s32.totalorder %s26_s26, 4   ;;  %s1497_s23 = sld [smem:[#allocation20_spill]] }
 0x40a   : > { %s1498_s30 = sld [smem:[#allocation19_spill]]  ;;  %s1499_s21 = smov %s1192_s22 }
 0x40b   : > { %s1501_s24 = smov %s1204_s25 }
 0x40c   :  { %25 = sbr.rel (!%p23_p7) target bundleno = 12 (0xc), region = 115 }
 0x40e   : > { %s1500_s22 = smov %s1496_s17 }
 0x410   : > { %s1502_s25 = smov %s1498_s30 }
 0x411   :  { %743 = vsyncpa [#allocation4], 1 }
 0x412   :  { %745 = vsyncpa [#allocation4 + $0x1], 1 }
 0x413   :  { %746 = vsyncpa [#allocation7], 1 }
 0x414   :  { %748 = vsyncpa [#allocation7 + $0x1], 1 }
 0x415   :  { %749 = vsyncpa [#allocation10], 1 }
 0x416   :  { %750 = vsyncpa [#allocation5], 1 }
 0x417   :  { %752 = vsyncpa [#allocation5 + $0x1], 1 }

</bundles_post_ra>
